<compile_context>
chip_gen: v5e
topology: v5e:2x2
jax: 0.10.0
libtpu: 0.0.40
codegen_flags: <defaults>
</compile_context>

<pallas_src>
import jax
import jax.numpy as jnp
from jax.experimental import pallas as pl
from jax.experimental.pallas import tpu as pltpu


def _policy_continue_kernel(xt_ref, w1t_ref, b1t_ref, w2t_ref, b2t_ref,
                            wht_ref, bht_ref, out_ref):
    xt = xt_ref[...]                                            # (S, TB)

    # fc1 + relu:  h^T = relu(W1^T @ x^T + b1)                  (H, TB)
    h = jnp.dot(w1t_ref[...], xt,
                preferred_element_type=jnp.float32) + b1t_ref[...]
    h = jnp.maximum(h, 0.0)

    # fc2 + relu                                                (H, TB)
    h = jnp.dot(w2t_ref[...], h,
                preferred_element_type=jnp.float32) + b2t_ref[...]
    h = jnp.maximum(h, 0.0)

    # fused heads: row 0 -> mu logits, row 1 -> sigma logits    (2, TB)
    heads = jnp.dot(wht_ref[...], h,
                    preferred_element_type=jnp.float32) + bht_ref[...]

    # mu = tanh(z) * 2                          (tanh on EUP)
    mu_all = jnp.tanh(heads) * 2.0
    # sigma = softplus(z) + 1e-5, stable:  max(z,0) + log1p(exp(-|z|))
    sig_all = (jnp.maximum(heads, 0.0)
               + jnp.log1p(jnp.exp(-jnp.abs(heads)))
               + 1e-5)

    # Per-row select: sublane 0 keeps mu, sublane 1 keeps sigma. Dense store.
    row = jax.lax.broadcasted_iota(jnp.int32, heads.shape, dimension=0)
    out_ref[...] = jnp.where(row == 0, mu_all, sig_all).astype(out_ref.dtype)


def _round_up(n, m):
    return ((n + m - 1) // m) * m


def _choose_tile(B, block_b):
    """Pick a lane-aligned batch tile; keep >=2 tiles for v7x when B is big."""
    if B <= 128:
        return B, 1                       # full-extent lane block for tiny B
    tb = min(block_b, _round_up(B, 128))
    if pl.cdiv(B, tb) < 2:
        # Split into (at least) two tiles so v7x's second TensorCore works.
        tb = max(128, _round_up(pl.cdiv(B, 2), 128))
    tb = _round_up(tb, 128)
    return tb, pl.cdiv(B, tb)


def policy_net_continue_forward(x, w1, b1, w2, b2, w_mu, b_mu, w_sig, b_sig,
                                *, block_b=4096):
    """x: (B, S); w1: (S, H); b1: (1, H); w2: (H, H); b2: (1, H);
    w_mu/w_sig: (H, 1); b_mu/b_sig: (1, 1)  ->  (mu, sigma), each (B, 1)."""
    B, S = x.shape
    H = w1.shape[1]

    # Batch-on-lanes layout: transpose x and the (tiny) weights once in the
    # wrapper so every kernel operand is lane-dense.
    xt = x.T                                                     # (S, B)
    w1t = w1.T                                                   # (H, S)
    b1t = b1.reshape(H, 1)                                       # (H, 1)
    w2t = w2.T                                                   # (H, H)
    b2t = b2.reshape(H, 1)                                       # (H, 1)
    wht = jnp.concatenate([w_mu, w_sig], axis=1).T               # (2, H)
    bht = jnp.concatenate([b_mu, b_sig], axis=1).reshape(2, 1)   # (2, 1)

    TB, n_tiles = _choose_tile(B, block_b)
    grid = (n_tiles,)

    out = pl.pallas_call(
        _policy_continue_kernel,
        out_shape=jax.ShapeDtypeStruct((2, B), jnp.float32),
        grid=grid,
        in_specs=[
            # streamed per batch tile (lane-dense)
            pl.BlockSpec((S, TB), lambda i: (0, i)),
            # weights/biases: constant index_map -> resident in VMEM
            pl.BlockSpec((H, S), lambda i: (0, 0)),
            pl.BlockSpec((H, 1), lambda i: (0, 0)),
            pl.BlockSpec((H, H), lambda i: (0, 0)),
            pl.BlockSpec((H, 1), lambda i: (0, 0)),
            pl.BlockSpec((2, H), lambda i: (0, 0)),
            pl.BlockSpec((2, 1), lambda i: (0, 0)),
        ],
        out_specs=pl.BlockSpec((2, TB), lambda i: (0, i)),
        compiler_params=pltpu.CompilerParams(
            dimension_semantics=("parallel",),   # batch tiles shard across TCs
        ),
    )(xt, w1t, b1t, w2t, b2t, wht, bht)

    mu = out[0, :].reshape(B, 1)
    sigma = out[1, :].reshape(B, 1)
    return mu, sigma


def init_params(key, state_dim, hidden_dim):
    """PyTorch nn.Linear-style init: uniform in +/- 1/sqrt(fan_in)."""
    ks = jax.random.split(key, 8)
    b_in = 1.0 / jnp.sqrt(state_dim)
    b_h = 1.0 / jnp.sqrt(hidden_dim)
    w1 = jax.random.uniform(ks[0], (state_dim, hidden_dim), jnp.float32, -b_in, b_in)
    b1 = jax.random.uniform(ks[1], (1, hidden_dim), jnp.float32, -b_in, b_in)
    w2 = jax.random.uniform(ks[2], (hidden_dim, hidden_dim), jnp.float32, -b_h, b_h)
    b2 = jax.random.uniform(ks[3], (1, hidden_dim), jnp.float32, -b_h, b_h)
    w_mu = jax.random.uniform(ks[4], (hidden_dim, 1), jnp.float32, -b_h, b_h)
    b_mu = jax.random.uniform(ks[5], (1, 1), jnp.float32, -b_h, b_h)
    w_sig = jax.random.uniform(ks[6], (hidden_dim, 1), jnp.float32, -b_h, b_h)
    b_sig = jax.random.uniform(ks[7], (1, 1), jnp.float32, -b_h, b_h)
    return w1, b1, w2, b2, w_mu, b_mu, w_sig, b_sig


def reference_forward(x, w1, b1, w2, b2, w_mu, b_mu, w_sig, b_sig):
    h = jnp.maximum(x @ w1 + b1, 0.0)
    h = jnp.maximum(h @ w2 + b2, 0.0)
    mu = jnp.tanh(h @ w_mu + b_mu) * 2.0
    sigma = jax.nn.softplus(h @ w_sig + b_sig) + 1e-5
    return mu, sigma


def _check(batch, state_dim, hidden_dim, key):
    kx, kp = jax.random.split(key)
    x = jax.random.normal(kx, (batch, state_dim), dtype=jnp.float32)
    params = init_params(kp, state_dim, hidden_dim)

    mu, sigma = policy_net_continue_forward(x, *params)
    mu = jax.block_until_ready(mu)
    sigma = jax.block_until_ready(sigma)

    ref_mu, ref_sigma = reference_forward(x, *params)

    assert mu.shape == (batch, 1) and sigma.shape == (batch, 1)
    assert jnp.allclose(mu, ref_mu, atol=1e-5, rtol=1e-5), "mu mismatch vs reference"
    assert jnp.allclose(sigma, ref_sigma, atol=1e-5, rtol=1e-5), "sigma mismatch vs reference"
    assert bool(jnp.all(jnp.abs(mu) <= 2.0 + 1e-6)), "mu must lie in [-2, 2]"
    assert bool(jnp.all(sigma > 0.0)), "sigma must be strictly positive"


if __name__ == "__main__":
    key = jax.random.PRNGKey(0)
    k_small, k_tiled = jax.random.split(key)

    # Small shapes consistent with the module (continuous control, 1-D action).
    _check(batch=8, state_dim=4, hidden_dim=32, key=k_small)

    # Exercise the multi-tile path (grid > 1, ragged final block).
    _check(batch=300, state_dim=4, hidden_dim=32, key=k_tiled)

    print("KERNEL_OK")
</pallas_src>

<mosaic_0001>
module attributes {stable_mosaic.version = 11 : i64} {
  func.func @_policy_continue_kernel(%arg0: i32, %arg1: memref<4x8xf32, #tpu.memory_space<vmem>>, %arg2: memref<32x4xf32, #tpu.memory_space<vmem>>, %arg3: memref<32x1xf32, #tpu.memory_space<vmem>>, %arg4: memref<32x32xf32, #tpu.memory_space<vmem>>, %arg5: memref<32x1xf32, #tpu.memory_space<vmem>>, %arg6: memref<2x32xf32, #tpu.memory_space<vmem>>, %arg7: memref<2x1xf32, #tpu.memory_space<vmem>>, %arg8: memref<2x8xf32, #tpu.memory_space<vmem>>) attributes {dimension_semantics = [#tpu.dimension_semantics<parallel>], iteration_bounds = array<i64: 1>, scalar_prefetch = 0 : i64, scratch_operands = 0 : i64, tpu.core_type = #tpu.core_type<tc>, window_params = [{transform_indices = @transform_0, window_bounds = array<i64: 4, 8>}, {pipeline_mode = #tpu.pipeline_mode<synchronous>, transform_indices = @transform_1, window_bounds = array<i64: 32, 4>}, {pipeline_mode = #tpu.pipeline_mode<synchronous>, transform_indices = @transform_2, window_bounds = array<i64: 32, 1>}, {pipeline_mode = #tpu.pipeline_mode<synchronous>, transform_indices = @transform_3, window_bounds = array<i64: 32, 32>}, {pipeline_mode = #tpu.pipeline_mode<synchronous>, transform_indices = @transform_4, window_bounds = array<i64: 32, 1>}, {pipeline_mode = #tpu.pipeline_mode<synchronous>, transform_indices = @transform_5, window_bounds = array<i64: 2, 32>}, {pipeline_mode = #tpu.pipeline_mode<synchronous>, transform_indices = @transform_6, window_bounds = array<i64: 2, 1>}, {transform_indices = @transform_7, window_bounds = array<i64: 2, 8>}]} {
    %c0 = arith.constant 0 : index
    %c0_0 = arith.constant 0 : index
    %0 = vector.load %arg1[%c0, %c0_0] : memref<4x8xf32, #tpu.memory_space<vmem>>, vector<4x8xf32>
    %c0_1 = arith.constant 0 : index
    %c0_2 = arith.constant 0 : index
    %1 = vector.load %arg2[%c0_1, %c0_2] : memref<32x4xf32, #tpu.memory_space<vmem>>, vector<32x4xf32>
    %cst = arith.constant dense<0.000000e+00> : vector<32x8xf32>
    %2 = tpu.matmul %1, %0, %cst {dimension_numbers = #tpu.dot_dimension_numbers<[1], [0], [0], [1], [0, 0, 1, 1], [], []>} : vector<32x4xf32>, vector<4x8xf32>, vector<32x8xf32> -> vector<32x8xf32>
    %c0_3 = arith.constant 0 : index
    %c0_4 = arith.constant 0 : index
    %3 = vector.load %arg3[%c0_3, %c0_4] : memref<32x1xf32, #tpu.memory_space<vmem>>, vector<32x1xf32>
    %4 = vector.broadcast %3 : vector<32x1xf32> to vector<32x8xf32>
    %5 = arith.addf %2, %4 : vector<32x8xf32>
    %cst_5 = arith.constant 0.000000e+00 : f32
    %6 = vector.broadcast %cst_5 : f32 to vector<32x8xf32>
    %7 = arith.maximumf %5, %6 : vector<32x8xf32>
    %c0_6 = arith.constant 0 : index
    %c0_7 = arith.constant 0 : index
    %8 = vector.load %arg4[%c0_6, %c0_7] : memref<32x32xf32, #tpu.memory_space<vmem>>, vector<32x32xf32>
    %cst_8 = arith.constant dense<0.000000e+00> : vector<32x8xf32>
    %9 = tpu.matmul %8, %7, %cst_8 {dimension_numbers = #tpu.dot_dimension_numbers<[1], [0], [0], [1], [0, 0, 1, 1], [], []>} : vector<32x32xf32>, vector<32x8xf32>, vector<32x8xf32> -> vector<32x8xf32>
    %c0_9 = arith.constant 0 : index
    %c0_10 = arith.constant 0 : index
    %10 = vector.load %arg5[%c0_9, %c0_10] : memref<32x1xf32, #tpu.memory_space<vmem>>, vector<32x1xf32>
    %11 = vector.broadcast %10 : vector<32x1xf32> to vector<32x8xf32>
    %12 = arith.addf %9, %11 : vector<32x8xf32>
    %cst_11 = arith.constant 0.000000e+00 : f32
    %13 = vector.broadcast %cst_11 : f32 to vector<32x8xf32>
    %14 = arith.maximumf %12, %13 : vector<32x8xf32>
    %c0_12 = arith.constant 0 : index
    %c0_13 = arith.constant 0 : index
    %15 = vector.load %arg6[%c0_12, %c0_13] : memref<2x32xf32, #tpu.memory_space<vmem>>, vector<2x32xf32>
    %cst_14 = arith.constant dense<0.000000e+00> : vector<2x8xf32>
    %16 = tpu.matmul %15, %14, %cst_14 {dimension_numbers = #tpu.dot_dimension_numbers<[1], [0], [0], [1], [0, 0, 1, 1], [], []>} : vector<2x32xf32>, vector<32x8xf32>, vector<2x8xf32> -> vector<2x8xf32>
    %c0_15 = arith.constant 0 : index
    %c0_16 = arith.constant 0 : index
    %17 = vector.load %arg7[%c0_15, %c0_16] : memref<2x1xf32, #tpu.memory_space<vmem>>, vector<2x1xf32>
    %18 = vector.broadcast %17 : vector<2x1xf32> to vector<2x8xf32>
    %19 = arith.addf %16, %18 : vector<2x8xf32>
    %20 = math.tanh %19 : vector<2x8xf32>
    %cst_17 = arith.constant 2.000000e+00 : f32
    %21 = vector.broadcast %cst_17 : f32 to vector<2x8xf32>
    %22 = arith.mulf %20, %21 : vector<2x8xf32>
    %cst_18 = arith.constant 0.000000e+00 : f32
    %23 = vector.broadcast %cst_18 : f32 to vector<2x8xf32>
    %24 = arith.maximumf %19, %23 : vector<2x8xf32>
    %25 = math.absf %19 : vector<2x8xf32>
    %cst_19 = arith.constant 0.000000e+00 : f32
    %26 = vector.broadcast %cst_19 : f32 to vector<2x8xf32>
    %27 = arith.subf %26, %25 : vector<2x8xf32>
    %28 = math.exp %27 : vector<2x8xf32>
    %29 = math.log1p %28 : vector<2x8xf32>
    %30 = arith.addf %24, %29 : vector<2x8xf32>
    %cst_20 = arith.constant 9.99999974E-6 : f32
    %31 = vector.broadcast %cst_20 : f32 to vector<2x8xf32>
    %32 = arith.addf %30, %31 : vector<2x8xf32>
    %33 = tpu.iota {dimensions = array<i32: 0>} : vector<2x8xi32>
    %c0_i32 = arith.constant 0 : i32
    %34 = vector.broadcast %c0_i32 : i32 to vector<2x8xi32>
    %35 = arith.cmpi eq, %33, %34 : vector<2x8xi32>
    %36 = arith.select %35, %22, %32 : vector<2x8xi1>, vector<2x8xf32>
    %c0_21 = arith.constant 0 : index
    %c0_22 = arith.constant 0 : index
    %37 = vector.load %arg8[%c0_21, %c0_22] : memref<2x8xf32, #tpu.memory_space<vmem>>, vector<2x8xf32>
    tpu.vector_store %arg8[%c0_21, %c0_22], %36 {strides = array<i32>} : memref<2x8xf32, #tpu.memory_space<vmem>>, vector<2x8xf32>,
    return
  }
  func.func @transform_0(%arg0: i32) -> (i32, i32) {
    %c0_i32 = arith.constant 0 : i32
    %c0_i32_0 = arith.constant 0 : i32
    return %c0_i32, %arg0 : i32, i32
  }
  func.func @transform_1(%arg0: i32) -> (i32, i32) {
    %c0_i32 = arith.constant 0 : i32
    %c0_i32_0 = arith.constant 0 : i32
    %c0_i32_1 = arith.constant 0 : i32
    return %c0_i32, %c0_i32_0 : i32, i32
  }
  func.func @transform_2(%arg0: i32) -> (i32, i32) {
    %c0_i32 = arith.constant 0 : i32
    %c0_i32_0 = arith.constant 0 : i32
    %c0_i32_1 = arith.constant 0 : i32
    return %c0_i32, %c0_i32_0 : i32, i32
  }
  func.func @transform_3(%arg0: i32) -> (i32, i32) {
    %c0_i32 = arith.constant 0 : i32
    %c0_i32_0 = arith.constant 0 : i32
    %c0_i32_1 = arith.constant 0 : i32
    return %c0_i32, %c0_i32_0 : i32, i32
  }
  func.func @transform_4(%arg0: i32) -> (i32, i32) {
    %c0_i32 = arith.constant 0 : i32
    %c0_i32_0 = arith.constant 0 : i32
    %c0_i32_1 = arith.constant 0 : i32
    return %c0_i32, %c0_i32_0 : i32, i32
  }
  func.func @transform_5(%arg0: i32) -> (i32, i32) {
    %c0_i32 = arith.constant 0 : i32
    %c0_i32_0 = arith.constant 0 : i32
    %c0_i32_1 = arith.constant 0 : i32
    return %c0_i32, %c0_i32_0 : i32, i32
  }
  func.func @transform_6(%arg0: i32) -> (i32, i32) {
    %c0_i32 = arith.constant 0 : i32
    %c0_i32_0 = arith.constant 0 : i32
    %c0_i32_1 = arith.constant 0 : i32
    return %c0_i32, %c0_i32_0 : i32, i32
  }
  func.func @transform_7(%arg0: i32) -> (i32, i32) {
    %c0_i32 = arith.constant 0 : i32
    %c0_i32_0 = arith.constant 0 : i32
    return %c0_i32, %arg0 : i32, i32
  }
}

</mosaic_0001>

<bundles_post_ra>
// kernel: tpu_custom_call.1
= control target key start
LH: loop header
LB: loop body
LE: loop exit
PB: predicated region body
PF: predicated region fallthrough
CT: control target
= control target key end

     0   :  { %vm69_vm0 = vcmask 1043456   ;;  %vm56_vm1 = vcmask 31744   ;;  %v302_v5 = vmov 0   ;;  %s413_s0 = inlined_call_operand.vmem [shape: f32[4,8], index: 0, kind: input, shape index: {}]   ;;  %s414_s1 = inlined_call_operand.vmem [shape: f32[32,4], index: 1, kind: input, shape index: {}]   ;;  %s415_s2 = inlined_call_operand.vmem [shape: f32[32,1], index: 2, kind: input, shape index: {}]   ;;  %s416_s3 = inlined_call_operand.vmem [shape: f32[32,32], index: 3, kind: input, shape index: {}]   ;;  %s417_s4 = inlined_call_operand.vmem [shape: f32[32,1], index: 4, kind: input, shape index: {}]   ;;  %s418_s5 = inlined_call_operand.vmem [shape: f32[2,32], index: 5, kind: input, shape index: {}]   ;;  %s419_s6 = inlined_call_operand.vmem [shape: f32[2,1], index: 6, kind: input, shape index: {}]   ;;  %s420_s7 = inlined_call_operand.hbm [shape: f32[2,8], index: 7, kind: output, shape index: {}]  }
   0x1   :  { %v27_v0 = vld [vmem:[%s413_s0] sm:$0xf]  ;;  %v31_v2 = vld [vmem:[%s414_s1 + $0x18] sm:$0xff]  ;;  %v33_v4 = vld [vmem:[%s415_s2 + $0x8] sm:$0xff]  ;;  %268 = vset.pattern.permute.xlu1 %v302_v5  ;;  %267 = vset.pattern.permute.xlu0 %v302_v5 }
   0x2   :  { %v28_v1 = vld [vmem:[%s414_s1] sm:$0xff]  ;;  %250 = vmatpush.msk.msra.mxu0 %vm69_vm0, %v27_v0  ;;  %260 = vmatpush.msk.msra.mxu2 %vm69_vm0, %v27_v0  ;;  %v35_v3 = vld [vmem:[%s415_s2 + $0x18] sm:$0xff] }
   0x3   :  { %251 = vmatmul.msk.f32.vlgmr.msra.gmra.mxu0 %vm56_vm1, %v28_v1  ;;  %254 = vmatmul.msk.f32.vlgmr.msra.gmra.mxu2 %vm56_vm1, %v31_v2 }
   0x4   :  { %53 = vperm.xlu0 %267, %v35_v3   ;;  %43 = vperm.xlu1 %268, %v33_v4  }
   0x5   :  { %12 = vsyncpa [#allocation3], 0  ;;  %269 = vset.pattern.permute.xlu2 %v302_v5  ;;  %v29_v6 = vld [vmem:[%s414_s1 + $0x8] sm:$0xff]  ;;  %v34_v7 = vld [vmem:[%s415_s2 + $0x10] sm:$0xff]  ;;  %vm134_vm2 = vcmask 261120   ;;  %v228_v62 = vlaneseq  ;;  %s241_s12 = sshll.u32 %s420_s7, 4  ;;  %s242_s12 = int_to_ptr.hbm [resolvable:$true] %s241_s12 }
   0x6   :  { %v32_v8 = vld [vmem:[%s415_s2] sm:$0xff]  ;;  %v30_v9 = vld [vmem:[%s414_s1 + $0x10] sm:$0xff]  ;;  %v111_v10 = vld [vmem:[%s417_s4 + $0x8] sm:$0xff]  ;;  %vm232_vm5 = vcmask 58368  }
   0x7   :  { %v110_v11 = vld [vmem:[%s417_s4] sm:$0xff]  ;;  %v113_v13 = vld [vmem:[%s417_s4 + $0x18] sm:$0xff]  ;;  %v112_v19 = vld [vmem:[%s417_s4 + $0x10] sm:$0xff]  ;;  %v229_v3 = vshrl.u32 %v228_v62, 7 }
   0x8   :  { %131 = vperm.xlu2 %269, %v113_v13   ;;  %v181_v24 = vld [vmem:[%s419_s6] sm:$0x3]  ;;  %v108_v32 = vld [vmem:[%s416_s3 + $0x10] sm:$0xff]  ;;  %v107_v33 = vld [vmem:[%s416_s3 + $0x8] sm:$0xff] }
   0x9   :  { %v106_v31 = vld [vmem:[%s416_s3] sm:$0xff]  ;;  %v109_v34 = vld [vmem:[%s416_s3 + $0x18] sm:$0xff]  ;;  %vm230_vm4 = vcmp.eq.s32.totalorder %v229_v3, 0 }
   0xa   :  { %v180_v51 = vld [vmem:[%s418_s5] sm:$0x3]  ;;  %s303_s5 = smov [#allocation2]  }
   0xb   :  { %252 = vmatmul.msk.f32.gmra.mxu0 %vm56_vm1, %v29_v6  ;;  %s239_s10 = sshll.u32 %s303_s5, 4  ;;  %s240_s10 = int_to_ptr.vmem [resolvable:$true] %s239_s10 }
   0xc   :  { %48 = vperm.xlu0 %267, %v34_v7   ;;  %38 = vperm.xlu1 %268, %v32_v8  }
  0x10   :  { %126 = vperm.xlu2 %269, %v112_v19  }
  0x13   :  { %253 = vmatmul.msk.f32.gmra.mxu0 %vm56_vm1, %v30_v9 }
  0x14   :  { %121 = vperm.xlu0 %267, %v111_v10   ;;  %116 = vperm.xlu1 %268, %v110_v11  }
  0x18   :  { %184 = vperm.xlu2 %269, %v181_v24  }
  0x62   :  { %v132_v35 = vpop.permute.xlu2 %131 }
  0x6a   :  { %v127_v38 = vpop.permute.xlu2 %126 }
  0x72   :  { %v185_v52 = vpop.permute.xlu2 %184 }
  0x76   :  { %v54_v14 = vpop.permute.xlu0 %53  ;;  %v44_v15 = vpop.permute.xlu1 %43 }
  0x7e   :  { %v49_v21 = vpop.permute.xlu0 %48  ;;  %v39_v22 = vpop.permute.xlu1 %38 }
  0x80   :  { %v90_v12 = vpop.f32.mrf.mxu0 }
  0x81   :  { %v91_v27 = vadd.f32 %v90_v12, %v39_v22 }
  0x83   :  { %v102_v30 = vmax.f32 %v91_v27, 0.0 }
  0x86   :  { %v99_v16 = vpop.f32.mrf.mxu2  ;;  %v122_v43 = vpop.permute.xlu0 %121 }
  0x87   :  { %v100_v18 = vadd.f32 %v99_v16, %v54_v14  ;;  %v117_v46 = vpop.permute.xlu1 %116 }
  0x88   :  { %v93_v17 = vpop.f32.mrf.mxu0 }
  0x89   :  { %v105_v20 = vmax.f32 %v100_v18, 0.0  ;;  %v94_v25 = vadd.f32 %v93_v17, %v44_v15 }
  0x8b   :  { %159 = vmatpush.msra.mxu1 %v105_v20  ;;  %261 = vmatpush.msra.mxu3 %v105_v20  ;;  %v103_v29 = vmax.f32 %v94_v25, 0.0 }
  0x90   :  { %v96_v23 = vpop.f32.mrf.mxu0 }
  0x91   :  { %v97_v26 = vadd.f32 %v96_v23, %v49_v21 }
  0x93   :  { %v104_v28 = vmax.f32 %v97_v26, 0.0 }
  0x95   :  { %160 = vmatpush.msra.mxu1 %v104_v28  ;;  %262 = vmatpush.msra.mxu3 %v104_v28 }
  0x97   :  { %161 = vmatpush.msra.mxu1 %v103_v29  ;;  %263 = vmatpush.msra.mxu3 %v103_v29 }
  0x99   :  { %162 = vmatpush.msra.mxu1 %v102_v30  ;;  %264 = vmatpush.msra.mxu3 %v102_v30 }
  0x9a   :  { %255 = vmatmul.msk.f32.vlgmr.msra.gmra.mxu1 %vm134_vm2, %v106_v31  ;;  %257 = vmatmul.msk.f32.vlgmr.msra.gmra.mxu3 %vm134_vm2, %v108_v32 }
  0xa2   :  { %256 = vmatmul.msk.f32.gmra.mxu1 %vm134_vm2, %v107_v33  ;;  %258 = vmatmul.msk.f32.gmra.mxu3 %vm134_vm2, %v109_v34 }
 0x117   :  { %v164_v36 = vpop.f32.mrf.mxu1 }
 0x118   :  { %v165_v47 = vadd.f32 %v164_v36, %v117_v46 }
 0x11a   :  { %v176_v50 = vmax.f32 %v165_v47, 0.0 }
 0x11d   :  { %v170_v37 = vpop.f32.mrf.mxu3 }
 0x11e   :  { %v171_v41 = vadd.f32 %v170_v37, %v127_v38 }
 0x11f   :  { %v167_v39 = vpop.f32.mrf.mxu1 }
 0x120   :  { %v168_v44 = vadd.f32 %v167_v39, %v122_v43  ;;  %v178_v48 = vmax.f32 %v171_v41, 0.0 }
 0x122   :  { %v177_v49 = vmax.f32 %v168_v44, 0.0 }
 0x125   :  { %v173_v40 = vpop.f32.mrf.mxu3 }
 0x126   :  { %v174_v42 = vadd.f32 %v173_v40, %v132_v35 }
 0x128   :  { %v179_v45 = vmax.f32 %v174_v42, 0.0 }
 0x12a   :  { %202 = vmatpush.msrb.mxu2 %v179_v45 }
 0x12c   :  { %203 = vmatpush.msrb.mxu2 %v178_v48 }
 0x12e   :  { %204 = vmatpush.msrb.mxu2 %v177_v49 }
 0x130   :  { %205 = vmatpush.msrb.mxu2 %v176_v50 }
 0x131   :  { %259 = vmatmul.msk.f32.vlgmr.msrb.gmra.mxu2 %vm134_vm2, %v180_v51 }
 0x1b4   :  { %v207_v53 = vpop.f32.mrf.mxu2 }
 0x1b5   :  { %v208_v54 = vadd.f32 %v207_v53, %v185_v52 }
 0x1b7   :  { %v213_v55 = vand.u32 2147483647, %v208_v54  ;;  %v212_v4 = vmax.f32 %v208_v54, 0.0 }
 0x1b9   :  { %v214_v56 = vsub.f32 0.0, %v213_v55 }
 0x1bb   :  { %v215_v57 = vmul.f32 1.442695, %v214_v56 }
 0x1bd   :  { %270 = vpow2.f32 %v215_v57 }
 0x1c3   :  { %v271_v58 = vpop.eup %270 }
 0x1c4   :  { %v217_v59 = vadd.f32 1.0, %v271_v58  ;;  %v220_v60 = vmul.f32 -0.5, %v271_v58  ;;  %v223_v63 = vand.u32 2147483647, %v271_v58 }
 0x1c6   :  { %272 = vlog2.f32 %v217_v59  ;;  %v221_v61 = vadd.f32 1.0, %v220_v60  ;;  %vm224_vm3 = vcmp.lt.f32.partialorder %v223_v63, 0.0004427343 }
 0x1c7   :  { %274 = vtanh.f32 %v208_v54 }
 0x1c8   :  { %v222_v2 = vmul.f32 %v271_v58, %v221_v61 }
 0x1cc   :  { %v273_v0 = vpop.eup %272 }
 0x1cd   :  { %v219_v1 = vmul.f32 0.6931472, %v273_v0  ;;  %v275_v5 = vpop.eup %274 }
 0x1ce   :  { %v211_v8 = vmul.f32 2.0, %v275_v5 }
 0x1cf   :  { %v225_v6 = vsel %vm224_vm3, %v222_v2, %v219_v1 }
 0x1d0   :  { %v226_v7 = vadd.f32 %v225_v6, %v212_v4 }
 0x1d2   :  { %v227_v9 = vadd.f32 1e-05, %v226_v7 }
 0x1d4   :  { %v231_v10 = vsel %vm230_vm4, %v211_v8, %v227_v9 }
 0x1d5   :  { %233 = vst.msk [vmem:[#allocation2] sm:$0x3] %vm232_vm5, %v231_v10 }
 0x1d6   :  { %244 = dma.vmem_to_hbm [thread:$0]  %s240_s10, 32, %s242_s12, [#allocation3]  }
 0x1d7   :  { %300 = dma.done.wait [#allocation3], 32  }
 0x1d8   :  { %301 = vsyncadd [#allocation3], 4294967264 }
 0x1d9   :  { %249 = vsyncpa [#allocation3], 1 }

</bundles_post_ra>
